<compile_context>
chip_gen: v6e
topology: v6e:2x2x1
jax: 0.10.0
libtpu: 0.0.40
codegen_flags: <defaults>
</compile_context>

<pallas_src>
import functools
import math

import jax
import jax.numpy as jnp
from jax.experimental import pallas as pl
from jax.experimental.pallas import tpu as pltpu


def _vmem_limit_bytes():
    # ~3/4 of physical VMEM: ~96 MiB on v5e/v6e (128 MiB), ~48 MiB on v7x (64 MiB).
    try:
        return int(pltpu.get_tpu_info().vmem_capacity_bytes * 3 // 4)
    except Exception:
        return 48 * 1024 * 1024


def _layernorm(x, w, b, eps=1e-5):
    mu = jnp.mean(x, axis=-1, keepdims=True)
    var = jnp.mean((x - mu) ** 2, axis=-1, keepdims=True)
    return (x - mu) * jax.lax.rsqrt(var + eps) * w + b


def _pick_tile(dim, cap, align):
    """Largest multiple of `align` that divides `dim` and is <= cap (or full dim)."""
    if dim <= cap:
        return dim
    t = (cap // align) * align
    while t >= align:
        if dim % t == 0:
            return t
        t -= align
    # TODO(synk): dims not divisible by `align` would need a padding path.
    raise ValueError(f"cannot tile dim={dim} with cap={cap}, align={align}")


# ----------------- stage 1: ln_1 + fused QKV projection + head-local RoPE -----------------
def _qkv_rope_kernel(x_ref, cos_ref, sin_ref, ln1w_ref, ln1b_ref, wqkv_ref,
                     q_ref, k_ref, v_ref, *, emb_dim, n_heads, compute_dtype):
    D = emb_dim
    hd = D // n_heads
    half = hd // 2

    x = x_ref[0]                                                    # (tq, D) f32
    h = _layernorm(x, ln1w_ref[0], ln1b_ref[0]).astype(compute_dtype)
    qkv = jnp.dot(h, wqkv_ref[...], preferred_element_type=jnp.float32)   # (tq, 3D)

    cos = cos_ref[...]                                              # (tq, D) f32
    sin = sin_ref[...]                                              # (tq, D) f32, sign folded

    def rope_full(z):                                               # head-local rotate-half
        parts = []
        for hh in range(n_heads):
            base = hh * hd
            parts.append(z[:, base + half:base + hd])
            parts.append(z[:, base:base + half])
        rot = jnp.concatenate(parts, axis=-1)
        return cos * z + sin * rot

    q_ref[0] = rope_full(qkv[:, :D]).astype(q_ref.dtype)            # standard head layout
    k_ref[0] = rope_full(qkv[:, D:2 * D]).astype(k_ref.dtype)
    v_ref[0] = qkv[:, 2 * D:].astype(v_ref.dtype)


# ------- stage 2: flash causal attention (all heads per step) + out-proj + residual + ln_2 -------
def _attn_out_ln2_kernel(x_ref, q_ref, k_ref, v_ref, wo_ref, ln2w_ref, ln2b_ref,
                         x1_ref, h2_ref, m_sc, l_sc, acc_sc,
                         *, tq, tk, n_heads, head_dim, compute_dtype):
    i = pl.program_id(1)              # q-tile index
    j = pl.program_id(2)              # kv-tile index (innermost, 'arbitrary')
    n_kv = pl.num_programs(2)
    hd = head_dim

    @pl.when(j == 0)
    def _():
        m_sc[...] = jnp.full_like(m_sc, -1e30)
        l_sc[...] = jnp.zeros_like(l_sc)
        acc_sc[...] = jnp.zeros_like(acc_sc)

    def update(masked):
        q = q_ref[0]                                                # (tq, D)
        k = k_ref[0]                                                # (tk, D)
        v = v_ref[0]                                                # (tk, D)
        if masked:
            qpos = i * tq + jax.lax.broadcasted_iota(jnp.int32, (tq, tk), 0)
            kpos = j * tk + jax.lax.broadcasted_iota(jnp.int32, (tq, tk), 1)
            future = kpos > qpos
        for h in range(n_heads):                                    # static loop over heads
            cols = slice(h * hd, (h + 1) * hd)
            s = jax.lax.dot_general(q[:, cols], k[:, cols],
                                    (((1,), (1,)), ((), ())),
                                    preferred_element_type=jnp.float32)
            if masked:
                s = jnp.where(future, -1e30, s)                     # finite mask (no inf-inf)
            m_prev = m_sc[:, h:h + 1]
            l_prev = l_sc[:, h:h + 1]
            m_new = jnp.maximum(m_prev, jnp.max(s, axis=-1, keepdims=True))
            alpha = jnp.exp(m_prev - m_new)
            p = jnp.exp(s - m_new)
            l_sc[:, h:h + 1] = alpha * l_prev + jnp.sum(p, axis=-1, keepdims=True)
            acc_sc[:, cols] = alpha * acc_sc[:, cols] + jnp.dot(
                p.astype(compute_dtype), v[:, cols],
                preferred_element_type=jnp.float32)
            m_sc[:, h:h + 1] = m_new

    visible = j * tk <= i * tq + (tq - 1)     # kv tile not entirely in the future
    straddle = j * tk + (tk - 1) > i * tq     # kv tile straddles the diagonal -> needs mask

    @pl.when(jnp.logical_and(visible, straddle))
    def _():
        update(masked=True)

    @pl.when(jnp.logical_and(visible, jnp.logical_not(straddle)))
    def _():
        update(masked=False)

    @pl.when(j == n_kv - 1)
    def _():
        # Normalize each head, then fuse the out-projection + residual + ln_2
        # (ctx never leaves VMEM / never round-trips HBM).
        parts = []
        for h in range(n_heads):
            cols = slice(h * hd, (h + 1) * hd)
            inv_l = pl.reciprocal(l_sc[:, h:h + 1], approx=True)
            parts.append(acc_sc[:, cols] * inv_l)
        ctx = jnp.concatenate(parts, axis=-1).astype(compute_dtype)          # (tq, D)
        x1 = jnp.dot(ctx, wo_ref[...], preferred_element_type=jnp.float32) + x_ref[0]
        x1_ref[0] = x1
        h2_ref[0] = _layernorm(x1, ln2w_ref[0], ln2b_ref[0]).astype(h2_ref.dtype)


# ----------------- stage 3: MLP (FF dim tiled, f32 accumulator) + residual -----------------
def _mlp_kernel(h2_ref, x1_ref, win_ref, bin_ref, wout_ref, bout_ref,
                o_ref, acc_ref, *, compute_dtype):
    j = pl.program_id(2)

    @pl.when(j == 0)
    def _():
        acc_ref[...] = x1_ref[0] + bout_ref[0]                    # residual + out bias once

    ff = jnp.dot(h2_ref[0], win_ref[...],
                 preferred_element_type=jnp.float32) + bin_ref[0]
    ff = jax.nn.gelu(ff, approximate=False)                        # exact erf GELU (nn.GELU)
    # TODO(synk): flip to approximate=True (EUP tanh) only if the MLP shows VALU saturation.
    acc_ref[...] += jnp.dot(ff.astype(compute_dtype), wout_ref[...],
                            preferred_element_type=jnp.float32)

    @pl.when(j == pl.num_programs(2) - 1)
    def _():
        o_ref[0] = acc_ref[...].astype(o_ref.dtype)


# ------------------------------------ wrapper ------------------------------------
def transformer_forward(x, params, n_heads, *, compute_dtype=jnp.bfloat16,
                        q_tile=256, kv_tile=256, ff_tile=1024):
    """x: (B, T, D) f32.  params in PyTorch layout (see __main__)."""
    (rope_cos, rope_sin, ln1w, ln1b, wq, wk, wv, wo,
     ln2w, ln2b, win, bin_, wout, bout) = params

    B, T, D = x.shape
    H = n_heads
    hd = D // H
    F = win.shape[0]                                   # ff intermediate dim (= mult * D)

    # ---- host-side preprocessing ----
    scale = 1.0 / math.sqrt(hd)                        # fold 1/sqrt(hd) into Wq (RoPE is linear)
    wqkv_t = jnp.concatenate(
        [jnp.asarray(wq).T * scale, jnp.asarray(wk).T, jnp.asarray(wv).T],
        axis=1).astype(compute_dtype)                  # (D, 3D) fused, pre-transposed
    wo_t = jnp.asarray(wo).T.astype(compute_dtype)     # (D, D)
    win_t = jnp.asarray(win).T.astype(compute_dtype)   # (D, F)
    wout_t = jnp.asarray(wout).T.astype(compute_dtype) # (F, D)

    # Full-width cos/sin tables (head-tiled); rotate-half sign folded into sin.
    sign = jnp.concatenate([-jnp.ones((hd // 2,), jnp.float32),
                            jnp.ones((hd // 2,), jnp.float32)])
    cos_full = jnp.tile(jnp.asarray(rope_cos[:T], jnp.float32), (1, H))            # (T, D)
    sin_full = jnp.tile(jnp.asarray(rope_sin[:T], jnp.float32) * sign[None, :], (1, H))

    ln1w_f = jnp.asarray(ln1w, jnp.float32).reshape(1, D)
    ln1b_f = jnp.asarray(ln1b, jnp.float32).reshape(1, D)
    ln2w_f = jnp.asarray(ln2w, jnp.float32).reshape(1, D)
    ln2b_f = jnp.asarray(ln2b, jnp.float32).reshape(1, D)
    bin_f = jnp.asarray(bin_, jnp.float32).reshape(1, F)
    bout_f = jnp.asarray(bout, jnp.float32).reshape(1, D)

    tq = _pick_tile(T, q_tile, 8)
    tk = _pick_tile(T, kv_tile, 8)
    tf = _pick_tile(F, ff_tile, 128)
    n_qt, n_kt, n_ft = T // tq, T // tk, F // tf
    vmem = _vmem_limit_bytes()

    # ---------------- stage 1: ln_1 + fused QKV + RoPE ----------------
    q, k, v = pl.pallas_call(
        functools.partial(_qkv_rope_kernel, emb_dim=D, n_heads=H,
                          compute_dtype=compute_dtype),
        out_shape=tuple(jax.ShapeDtypeStruct((B, T, D), compute_dtype) for _ in range(3)),
        grid=(B, n_qt),
        in_specs=[
            pl.BlockSpec((1, tq, D), lambda b, i: (b, i, 0)),    # x
            pl.BlockSpec((tq, D), lambda b, i: (i, 0)),           # cos (head-tiled)
            pl.BlockSpec((tq, D), lambda b, i: (i, 0)),           # sin (head-tiled, signed)
            pl.BlockSpec((1, D), lambda b, i: (0, 0)),            # ln1 w
            pl.BlockSpec((1, D), lambda b, i: (0, 0)),            # ln1 b
            pl.BlockSpec((D, 3 * D), lambda b, i: (0, 0)),        # fused Wqkv^T
        ],
        out_specs=tuple(pl.BlockSpec((1, tq, D), lambda b, i: (b, i, 0)) for _ in range(3)),
        compiler_params=pltpu.CompilerParams(
            dimension_semantics=("parallel", "parallel"),
            vmem_limit_bytes=vmem),
    )(x, cos_full, sin_full, ln1w_f, ln1b_f, wqkv_t)

    # ---------------- stage 2: flash attention + out-proj + residual + ln_2 ----------------
    def kv_map(b, i, j):
        # Clamp the kv block index for fully-future tiles so Pallas elides the DMA.
        j_eff = jnp.minimum(j, (i * tq + tq - 1) // tk)
        return (b, j_eff, 0)

    x1, h2 = pl.pallas_call(
        functools.partial(_attn_out_ln2_kernel, tq=tq, tk=tk, n_heads=H,
                          head_dim=hd, compute_dtype=compute_dtype),
        out_shape=(jax.ShapeDtypeStruct((B, T, D), jnp.float32),      # x1 (residual stream)
                   jax.ShapeDtypeStruct((B, T, D), compute_dtype)),   # h2 = ln_2(x1)
        grid=(B, n_qt, n_kt),
        in_specs=[
            pl.BlockSpec((1, tq, D), lambda b, i, j: (b, i, 0)),   # x (residual)
            pl.BlockSpec((1, tq, D), lambda b, i, j: (b, i, 0)),   # q (all heads, lane-dense)
            pl.BlockSpec((1, tk, D), kv_map),                       # k (causal DMA clamp)
            pl.BlockSpec((1, tk, D), kv_map),                       # v (causal DMA clamp)
            pl.BlockSpec((D, D), lambda b, i, j: (0, 0)),           # Wo^T
            pl.BlockSpec((1, D), lambda b, i, j: (0, 0)),           # ln2 w
            pl.BlockSpec((1, D), lambda b, i, j: (0, 0)),           # ln2 b
        ],
        out_specs=(pl.BlockSpec((1, tq, D), lambda b, i, j: (b, i, 0)),
                   pl.BlockSpec((1, tq, D), lambda b, i, j: (b, i, 0))),
        scratch_shapes=[
            pltpu.VMEM((tq, H), jnp.float32),      # running max (per head)
            pltpu.VMEM((tq, H), jnp.float32),      # running sum (per head)
            pltpu.VMEM((tq, D), jnp.float32),      # context accumulator (all heads)
        ],
        compiler_params=pltpu.CompilerParams(
            dimension_semantics=("parallel", "parallel", "arbitrary"),
            vmem_limit_bytes=vmem),
    )(x, q, k, v, wo_t, ln2w_f, ln2b_f)

    # ---------------- stage 3: MLP (FF-dim tiled) + residual ----------------
    out = pl.pallas_call(
        functools.partial(_mlp_kernel, compute_dtype=compute_dtype),
        out_shape=jax.ShapeDtypeStruct((B, T, D), jnp.float32),
        grid=(B, n_qt, n_ft),
        in_specs=[
            pl.BlockSpec((1, tq, D), lambda b, i, j: (b, i, 0)),   # h2
            pl.BlockSpec((1, tq, D), lambda b, i, j: (b, i, 0)),   # x1 (residual)
            pl.BlockSpec((D, tf), lambda b, i, j: (0, j)),          # Win^T tile
            pl.BlockSpec((1, tf), lambda b, i, j: (0, j)),          # b_in tile
            pl.BlockSpec((tf, D), lambda b, i, j: (j, 0)),          # Wout^T tile
            pl.BlockSpec((1, D), lambda b, i, j: (0, 0)),           # b_out
        ],
        out_specs=pl.BlockSpec((1, tq, D), lambda b, i, j: (b, i, 0)),
        scratch_shapes=[pltpu.VMEM((tq, D), jnp.float32)],
        compiler_params=pltpu.CompilerParams(
            dimension_semantics=("parallel", "parallel", "arbitrary"),
            vmem_limit_bytes=vmem),
    )(h2, x1, win_t, bin_f, wout_t, bout_f)

    return out


# ---------------------------- pure-JAX reference ----------------------------
def _reference(x, params, n_heads):
    (cos, sin, ln1w, ln1b, wq, wk, wv, wo, ln2w, ln2b, win, bin_, wout, bout) = params
    B, T, D = x.shape
    hd = D // n_heads

    def ln(z, w, b):
        mu = jnp.mean(z, axis=-1, keepdims=True)
        var = jnp.mean((z - mu) ** 2, axis=-1, keepdims=True)
        return (z - mu) / jnp.sqrt(var + 1e-5) * w[0] + b[0]

    def rope(z):  # z: (B, H, T, hd)
        lhs, rhs = z[..., :hd // 2], z[..., hd // 2:]
        rot = jnp.concatenate([-rhs, lhs], axis=-1)
        return cos[None, None] * z + sin[None, None] * rot

    orig = x
    h = ln(x, ln1w, ln1b)
    q = (h @ wq.T).reshape(B, T, n_heads, hd).transpose(0, 2, 1, 3)
    k = (h @ wk.T).reshape(B, T, n_heads, hd).transpose(0, 2, 1, 3)
    v = (h @ wv.T).reshape(B, T, n_heads, hd).transpose(0, 2, 1, 3)
    q, k = rope(q), rope(k)
    scores = jnp.einsum("bhtd,bhsd->bhts", q, k) / (hd ** 0.5)
    mask = jnp.triu(jnp.ones((T, T), bool), k=1)
    scores = jnp.where(mask[None, None], -jnp.inf, scores)
    p = jax.nn.softmax(scores, axis=-1)
    ctx = jnp.einsum("bhts,bhsd->bhtd", p, v).transpose(0, 2, 1, 3).reshape(B, T, D)
    x1 = ctx @ wo.T + orig

    h2 = ln(x1, ln2w, ln2b)
    ff = jax.nn.gelu(h2 @ win.T + bin_[0], approximate=False)
    ff = ff @ wout.T + bout[0]
    return ff + x1


if __name__ == "__main__":
    B, T, D, H, MULT = 2, 16, 32, 4, 4
    hd = D // H

    key = jax.random.PRNGKey(0)
    ks = jax.random.split(key, 13)

    # RoPE tables (context_length, head_dim), "rotate-half" convention.
    inv_freq = 1.0 / (10000.0 ** (jnp.arange(0, hd // 2, dtype=jnp.float32) * 2.0 / hd))
    pos = jnp.arange(T, dtype=jnp.float32)
    freqs = pos[:, None] * inv_freq[None, :]
    rope_cos = jnp.concatenate([jnp.cos(freqs), jnp.cos(freqs)], axis=-1)   # (T, hd)
    rope_sin = jnp.concatenate([jnp.sin(freqs), jnp.sin(freqs)], axis=-1)   # (T, hd)

    s = 0.05
    wq = s * jax.random.normal(ks[0], (D, D), jnp.float32)
    wk = s * jax.random.normal(ks[1], (D, D), jnp.float32)
    wv = s * jax.random.normal(ks[2], (D, D), jnp.float32)
    wo = s * jax.random.normal(ks[3], (D, D), jnp.float32)
    win = s * jax.random.normal(ks[4], (D * MULT, D), jnp.float32)
    bin_ = s * jax.random.normal(ks[5], (1, D * MULT), jnp.float32)
    wout = s * jax.random.normal(ks[6], (D, D * MULT), jnp.float32)
    bout = s * jax.random.normal(ks[7], (1, D), jnp.float32)
    ln1w = 1.0 + 0.1 * jax.random.normal(ks[8], (1, D), jnp.float32)
    ln1b = 0.1 * jax.random.normal(ks[9], (1, D), jnp.float32)
    ln2w = 1.0 + 0.1 * jax.random.normal(ks[10], (1, D), jnp.float32)
    ln2b = 0.1 * jax.random.normal(ks[11], (1, D), jnp.float32)

    params = (rope_cos, rope_sin, ln1w, ln1b, wq, wk, wv, wo,
              ln2w, ln2b, win, bin_, wout, bout)

    x = jax.random.normal(ks[12], (B, T, D), jnp.float32)

    ref = _reference(x, params, n_heads=H)

    # f32 MXU operands, small tiles -> exercises multi-tile causal grid
    # (skipped / unmasked / diagonal kv tiles and the DMA clamp).
    out_f32 = jax.block_until_ready(
        transformer_forward(x, params, n_heads=H, compute_dtype=jnp.float32,
                            q_tile=8, kv_tile=8))
    assert out_f32.shape == (B, T, D)
    err32 = float(jnp.max(jnp.abs(out_f32 - ref)))
    assert err32 < 2e-2, err32

    # bf16 MXU operands / f32 accumulation (default production path), full-size tiles.
    out_bf16 = jax.block_until_ready(
        transformer_forward(x, params, n_heads=H))
    err16 = float(jnp.max(jnp.abs(out_bf16 - ref)))
    assert err16 < 1e-1, err16

    print("KERNEL_OK")
</pallas_src>

<mosaic_0001>
module attributes {stable_mosaic.version = 11 : i64} {
  func.func @_qkv_rope_kernel(%arg0: i32, %arg1: i32, %arg2: memref<1x8x32xf32, #tpu.memory_space<vmem>>, %arg3: memref<8x32xf32, #tpu.memory_space<vmem>>, %arg4: memref<8x32xf32, #tpu.memory_space<vmem>>, %arg5: memref<1x32xf32, #tpu.memory_space<vmem>>, %arg6: memref<1x32xf32, #tpu.memory_space<vmem>>, %arg7: memref<32x96xf32, #tpu.memory_space<vmem>>, %arg8: memref<1x8x32xf32, #tpu.memory_space<vmem>>, %arg9: memref<1x8x32xf32, #tpu.memory_space<vmem>>, %arg10: memref<1x8x32xf32, #tpu.memory_space<vmem>>) attributes {dimension_semantics = [#tpu.dimension_semantics<parallel>, #tpu.dimension_semantics<parallel>], iteration_bounds = array<i64: 2, 2>, scalar_prefetch = 0 : i64, scratch_operands = 0 : i64, tpu.core_type = #tpu.core_type<tc>, window_params = [{transform_indices = @transform_0, window_bounds = array<i64: 1, 8, 32>}, {transform_indices = @transform_1, window_bounds = array<i64: 8, 32>}, {transform_indices = @transform_2, window_bounds = array<i64: 8, 32>}, {pipeline_mode = #tpu.pipeline_mode<synchronous>, transform_indices = @transform_3, window_bounds = array<i64: 1, 32>}, {pipeline_mode = #tpu.pipeline_mode<synchronous>, transform_indices = @transform_4, window_bounds = array<i64: 1, 32>}, {pipeline_mode = #tpu.pipeline_mode<synchronous>, transform_indices = @transform_5, window_bounds = array<i64: 32, 96>}, {transform_indices = @transform_6, window_bounds = array<i64: 1, 8, 32>}, {transform_indices = @transform_7, window_bounds = array<i64: 1, 8, 32>}, {transform_indices = @transform_8, window_bounds = array<i64: 1, 8, 32>}]} {
    %c0 = arith.constant 0 : index
    %c0_0 = arith.constant 0 : index
    %c0_1 = arith.constant 0 : index
    %0 = vector.load %arg2[%c0, %c0_0, %c0_1] : memref<1x8x32xf32, #tpu.memory_space<vmem>>, vector<1x8x32xf32>
    %1 = vector.shape_cast %0 : vector<1x8x32xf32> to vector<8x32xf32>
    %c0_2 = arith.constant 0 : index
    %c0_3 = arith.constant 0 : index
    %2 = vector.load %arg5[%c0_2, %c0_3] : memref<1x32xf32, #tpu.memory_space<vmem>>, vector<1x32xf32>
    %3 = vector.shape_cast %2 : vector<1x32xf32> to vector<32xf32>
    %c0_4 = arith.constant 0 : index
    %c0_5 = arith.constant 0 : index
    %4 = vector.load %arg6[%c0_4, %c0_5] : memref<1x32xf32, #tpu.memory_space<vmem>>, vector<1x32xf32>
    %5 = vector.shape_cast %4 : vector<1x32xf32> to vector<32xf32>
    %cst = arith.constant dense<0.000000e+00> : vector<8xf32>
    %6 = vector.multi_reduction <add>, %1, %cst [1] : vector<8x32xf32> to vector<8xf32>
    %7 = vector.shape_cast %6 : vector<8xf32> to vector<8x1xf32>
    %cst_6 = arith.constant 3.200000e+01 : f32
    %8 = vector.broadcast %cst_6 : f32 to vector<8x1xf32>
    %9 = arith.divf %7, %8 : vector<8x1xf32>
    %10 = vector.broadcast %9 : vector<8x1xf32> to vector<8x32xf32>
    %11 = arith.subf %1, %10 : vector<8x32xf32>
    %12 = arith.mulf %11, %11 : vector<8x32xf32>
    %cst_7 = arith.constant dense<0.000000e+00> : vector<8xf32>
    %13 = vector.multi_reduction <add>, %12, %cst_7 [1] : vector<8x32xf32> to vector<8xf32>
    %14 = vector.shape_cast %13 : vector<8xf32> to vector<8x1xf32>
    %cst_8 = arith.constant 3.200000e+01 : f32
    %15 = vector.broadcast %cst_8 : f32 to vector<8x1xf32>
    %16 = arith.divf %14, %15 : vector<8x1xf32>
    %17 = vector.broadcast %9 : vector<8x1xf32> to vector<8x32xf32>
    %18 = arith.subf %1, %17 : vector<8x32xf32>
    %cst_9 = arith.constant 9.99999974E-6 : f32
    %19 = vector.broadcast %cst_9 : f32 to vector<8x1xf32>
    %20 = arith.addf %16, %19 : vector<8x1xf32>
    %21 = math.rsqrt %20 : vector<8x1xf32>
    %22 = vector.broadcast %21 : vector<8x1xf32> to vector<8x32xf32>
    %23 = arith.mulf %18, %22 : vector<8x32xf32>
    %24 = vector.shape_cast %3 : vector<32xf32> to vector<1x32xf32>
    %25 = vector.broadcast %24 : vector<1x32xf32> to vector<8x32xf32>
    %26 = arith.mulf %23, %25 : vector<8x32xf32>
    %27 = vector.shape_cast %5 : vector<32xf32> to vector<1x32xf32>
    %28 = vector.broadcast %27 : vector<1x32xf32> to vector<8x32xf32>
    %29 = arith.addf %26, %28 : vector<8x32xf32>
    %c0_10 = arith.constant 0 : index
    %c0_11 = arith.constant 0 : index
    %30 = vector.load %arg7[%c0_10, %c0_11] : memref<32x96xf32, #tpu.memory_space<vmem>>, vector<32x96xf32>
    %cst_12 = arith.constant dense<0.000000e+00> : vector<8x96xf32>
    %31 = tpu.matmul %29, %30, %cst_12 {dimension_numbers = #tpu.dot_dimension_numbers<[1], [0], [0], [1], [0, 0, 1, 1], [], []>} : vector<8x32xf32>, vector<32x96xf32>, vector<8x96xf32> -> vector<8x96xf32>
    %c0_13 = arith.constant 0 : index
    %c0_14 = arith.constant 0 : index
    %32 = vector.load %arg3[%c0_13, %c0_14] : memref<8x32xf32, #tpu.memory_space<vmem>>, vector<8x32xf32>
    %c0_15 = arith.constant 0 : index
    %c0_16 = arith.constant 0 : index
    %33 = vector.load %arg4[%c0_15, %c0_16] : memref<8x32xf32, #tpu.memory_space<vmem>>, vector<8x32xf32>
    %34 = vector.extract_strided_slice %31 {offsets = [0, 0], sizes = [8, 32], strides = [1, 1]} : vector<8x96xf32> to vector<8x32xf32>
    %35 = vector.extract_strided_slice %34 {offsets = [0, 4], sizes = [8, 4], strides = [1, 1]} : vector<8x32xf32> to vector<8x4xf32>
    %36 = vector.extract_strided_slice %34 {offsets = [0, 0], sizes = [8, 4], strides = [1, 1]} : vector<8x32xf32> to vector<8x4xf32>
    %37 = vector.extract_strided_slice %34 {offsets = [0, 12], sizes = [8, 4], strides = [1, 1]} : vector<8x32xf32> to vector<8x4xf32>
    %38 = vector.extract_strided_slice %34 {offsets = [0, 8], sizes = [8, 4], strides = [1, 1]} : vector<8x32xf32> to vector<8x4xf32>
    %39 = vector.extract_strided_slice %34 {offsets = [0, 20], sizes = [8, 4], strides = [1, 1]} : vector<8x32xf32> to vector<8x4xf32>
    %40 = vector.extract_strided_slice %34 {offsets = [0, 16], sizes = [8, 4], strides = [1, 1]} : vector<8x32xf32> to vector<8x4xf32>
    %41 = vector.extract_strided_slice %34 {offsets = [0, 28], sizes = [8, 4], strides = [1, 1]} : vector<8x32xf32> to vector<8x4xf32>
    %42 = vector.extract_strided_slice %34 {offsets = [0, 24], sizes = [8, 4], strides = [1, 1]} : vector<8x32xf32> to vector<8x4xf32>
    %43 = tpu.concatenate %35, %36, %37, %38, %39, %40, %41, %42 in 1 : vector<8x4xf32>, vector<8x4xf32>, vector<8x4xf32>, vector<8x4xf32>, vector<8x4xf32>, vector<8x4xf32>, vector<8x4xf32>, vector<8x4xf32> -> vector<8x32xf32>
    %44 = arith.mulf %32, %34 : vector<8x32xf32>
    %45 = arith.mulf %33, %43 : vector<8x32xf32>
    %46 = arith.addf %44, %45 : vector<8x32xf32>
    %c0_17 = arith.constant 0 : index
    %c0_18 = arith.constant 0 : index
    %c0_19 = arith.constant 0 : index
    %47 = vector.load %arg8[%c0_17, %c0_18, %c0_19] : memref<1x8x32xf32, #tpu.memory_space<vmem>>, vector<1x8x32xf32>
    %48 = vector.shape_cast %47 : vector<1x8x32xf32> to vector<8x32xf32>
    %49 = vector.shape_cast %46 : vector<8x32xf32> to vector<1x8x32xf32>
    tpu.vector_store %arg8[%c0_17, %c0_18, %c0_19], %49 {strides = array<i32>} : memref<1x8x32xf32, #tpu.memory_space<vmem>>, vector<1x8x32xf32>,
    %50 = vector.extract_strided_slice %31 {offsets = [0, 32], sizes = [8, 32], strides = [1, 1]} : vector<8x96xf32> to vector<8x32xf32>
    %51 = vector.extract_strided_slice %50 {offsets = [0, 4], sizes = [8, 4], strides = [1, 1]} : vector<8x32xf32> to vector<8x4xf32>
    %52 = vector.extract_strided_slice %50 {offsets = [0, 0], sizes = [8, 4], strides = [1, 1]} : vector<8x32xf32> to vector<8x4xf32>
    %53 = vector.extract_strided_slice %50 {offsets = [0, 12], sizes = [8, 4], strides = [1, 1]} : vector<8x32xf32> to vector<8x4xf32>
    %54 = vector.extract_strided_slice %50 {offsets = [0, 8], sizes = [8, 4], strides = [1, 1]} : vector<8x32xf32> to vector<8x4xf32>
    %55 = vector.extract_strided_slice %50 {offsets = [0, 20], sizes = [8, 4], strides = [1, 1]} : vector<8x32xf32> to vector<8x4xf32>
    %56 = vector.extract_strided_slice %50 {offsets = [0, 16], sizes = [8, 4], strides = [1, 1]} : vector<8x32xf32> to vector<8x4xf32>
    %57 = vector.extract_strided_slice %50 {offsets = [0, 28], sizes = [8, 4], strides = [1, 1]} : vector<8x32xf32> to vector<8x4xf32>
    %58 = vector.extract_strided_slice %50 {offsets = [0, 24], sizes = [8, 4], strides = [1, 1]} : vector<8x32xf32> to vector<8x4xf32>
    %59 = tpu.concatenate %51, %52, %53, %54, %55, %56, %57, %58 in 1 : vector<8x4xf32>, vector<8x4xf32>, vector<8x4xf32>, vector<8x4xf32>, vector<8x4xf32>, vector<8x4xf32>, vector<8x4xf32>, vector<8x4xf32> -> vector<8x32xf32>
    %60 = arith.mulf %32, %50 : vector<8x32xf32>
    %61 = arith.mulf %33, %59 : vector<8x32xf32>
    %62 = arith.addf %60, %61 : vector<8x32xf32>
    %c0_20 = arith.constant 0 : index
    %c0_21 = arith.constant 0 : index
    %c0_22 = arith.constant 0 : index
    %63 = vector.load %arg9[%c0_20, %c0_21, %c0_22] : memref<1x8x32xf32, #tpu.memory_space<vmem>>, vector<1x8x32xf32>
    %64 = vector.shape_cast %63 : vector<1x8x32xf32> to vector<8x32xf32>
    %65 = vector.shape_cast %62 : vector<8x32xf32> to vector<1x8x32xf32>
    tpu.vector_store %arg9[%c0_20, %c0_21, %c0_22], %65 {strides = array<i32>} : memref<1x8x32xf32, #tpu.memory_space<vmem>>, vector<1x8x32xf32>,
    %66 = vector.extract_strided_slice %31 {offsets = [0, 64], sizes = [8, 32], strides = [1, 1]} : vector<8x96xf32> to vector<8x32xf32>
    %c0_23 = arith.constant 0 : index
    %c0_24 = arith.constant 0 : index
    %c0_25 = arith.constant 0 : index
    %67 = vector.load %arg10[%c0_23, %c0_24, %c0_25] : memref<1x8x32xf32, #tpu.memory_space<vmem>>, vector<1x8x32xf32>
    %68 = vector.shape_cast %67 : vector<1x8x32xf32> to vector<8x32xf32>
    %69 = vector.shape_cast %66 : vector<8x32xf32> to vector<1x8x32xf32>
    tpu.vector_store %arg10[%c0_23, %c0_24, %c0_25], %69 {strides = array<i32>} : memref<1x8x32xf32, #tpu.memory_space<vmem>>, vector<1x8x32xf32>,
    return
  }
  func.func @transform_0(%arg0: i32, %arg1: i32) -> (i32, i32, i32) {
    %c0_i32 = arith.constant 0 : i32
    %c0_i32_0 = arith.constant 0 : i32
    return %arg0, %arg1, %c0_i32 : i32, i32, i32
  }
  func.func @transform_1(%arg0: i32, %arg1: i32) -> (i32, i32) {
    %c0_i32 = arith.constant 0 : i32
    %c0_i32_0 = arith.constant 0 : i32
    return %arg1, %c0_i32 : i32, i32
  }
  func.func @transform_2(%arg0: i32, %arg1: i32) -> (i32, i32) {
    %c0_i32 = arith.constant 0 : i32
    %c0_i32_0 = arith.constant 0 : i32
    return %arg1, %c0_i32 : i32, i32
  }
  func.func @transform_3(%arg0: i32, %arg1: i32) -> (i32, i32) {
    %c0_i32 = arith.constant 0 : i32
    %c0_i32_0 = arith.constant 0 : i32
    %c0_i32_1 = arith.constant 0 : i32
    return %c0_i32, %c0_i32_0 : i32, i32
  }
  func.func @transform_4(%arg0: i32, %arg1: i32) -> (i32, i32) {
    %c0_i32 = arith.constant 0 : i32
    %c0_i32_0 = arith.constant 0 : i32
    %c0_i32_1 = arith.constant 0 : i32
    return %c0_i32, %c0_i32_0 : i32, i32
  }
  func.func @transform_5(%arg0: i32, %arg1: i32) -> (i32, i32) {
    %c0_i32 = arith.constant 0 : i32
    %c0_i32_0 = arith.constant 0 : i32
    %c0_i32_1 = arith.constant 0 : i32
    return %c0_i32, %c0_i32_0 : i32, i32
  }
  func.func @transform_6(%arg0: i32, %arg1: i32) -> (i32, i32, i32) {
    %c0_i32 = arith.constant 0 : i32
    %c0_i32_0 = arith.constant 0 : i32
    return %arg0, %arg1, %c0_i32 : i32, i32, i32
  }
  func.func @transform_7(%arg0: i32, %arg1: i32) -> (i32, i32, i32) {
    %c0_i32 = arith.constant 0 : i32
    %c0_i32_0 = arith.constant 0 : i32
    return %arg0, %arg1, %c0_i32 : i32, i32, i32
  }
  func.func @transform_8(%arg0: i32, %arg1: i32) -> (i32, i32, i32) {
    %c0_i32 = arith.constant 0 : i32
    %c0_i32_0 = arith.constant 0 : i32
    return %arg0, %arg1, %c0_i32 : i32, i32, i32
  }
}

</mosaic_0001>

<bundles_post_ra>
// kernel: tpu_custom_call.1
= control target key start
LH: loop header
LB: loop body
LE: loop exit
PB: predicated region body
PF: predicated region fallthrough
CT: control target
= control target key end

     0   :  { %s1829_s0 = inlined_call_operand.hbm [shape: f32[2,16,32], index: 0, kind: input, shape index: {}]   ;;  %s1830_s1 = inlined_call_operand.hbm [shape: f32[16,32], index: 1, kind: input, shape index: {}]   ;;  %s1831_s2 = inlined_call_operand.hbm [shape: f32[16,32], index: 2, kind: input, shape index: {}]   ;;  %s1832_s3 = inlined_call_operand.vmem [shape: f32[1,32], index: 3, kind: input, shape index: {}]   ;;  %s1833_s4 = inlined_call_operand.vmem [shape: f32[1,32], index: 4, kind: input, shape index: {}]   ;;  %s1834_s5 = inlined_call_operand.hbm [shape: f32[32,96], index: 5, kind: input, shape index: {}]   ;;  %s1835_s6 = inlined_call_operand.hbm [shape: f32[2,16,32], index: 6, kind: output, shape index: {0}]   ;;  %s1836_s7 = inlined_call_operand.hbm [shape: f32[2,16,32], index: 7, kind: output, shape index: {1}]   ;;  %s1837_s8 = inlined_call_operand.hbm [shape: f32[2,16,32], index: 8, kind: output, shape index: {2}]  }
   0x1   :  { %1860 = sst [smem:[#allocation29_spill]] %s1829_s0 }
   0x2   :  { %1861 = sst [smem:[#allocation30_spill]] %s1830_s1 }
   0x3   :  { %1862 = sst [smem:[#allocation31_spill]] %s1832_s3 }
   0x4   :  { %1863 = sst [smem:[#allocation32_spill]] %s1833_s4 }
   0x5   :  { %1864 = sst [smem:[#allocation33_spill]] %s1834_s5 }
   0x6   :  { %1865 = sst [smem:[#allocation34_spill]] %s1835_s6 }
   0x7   :  { %1866 = sst [smem:[#allocation35_spill]] %s1836_s7 }
   0x8   :  { %1867 = sst [smem:[#allocation36_spill]] %s1837_s8 }
   0x9   :  { %14 = vsyncpa [#allocation3], 0 }
   0xa   :  { %16 = vsyncpa [#allocation3 + $0x1], 0 }
   0xb   :  { %17 = vsyncpa [#allocation6], 0 }
   0xc   :  { %19 = vsyncpa [#allocation6 + $0x1], 0 }
   0xd   :  { %20 = vsyncpa [#allocation9], 0 }
   0xe   :  { %21 = vsyncpa [#allocation4], 0 }
   0xf   :  { %23 = vsyncpa [#allocation4 + $0x1], 0 }
  0x10   :  { %24 = vsyncpa [#allocation12], 0 }
  0x11   :  { %26 = vsyncpa [#allocation12 + $0x1], 0  ;;  %s1419_s27 = smov 0   ;;  %s1421_s28 = smov 0  }
  0x12   :  { %s1423_s29 = smov 0   ;;  %s1425_s30 = smov 0  }
  0x13   :  { %s1427_s9 = smov 0   ;;  %s1429_s10 = smov 0  }
  0x14   :  { %s1431_s11 = smov 0   ;;  %s1433_s12 = smov 0  }
  0x15   :  { %s1435_s13 = smov 0   ;;  %s1437_s14 = smov 0  }
  0x16   :  { %s1439_s15 = smov 0  }
  0x17 LB: > { %1868 = sst [smem:[#allocation19_spill]] %s1323_s29  ;;  %s41_s16 = sadd.s32 1, %s1347_s13  ;;  %s1355_s15 = sphi %s1439_s15, %s32_s15   ;;  %s1351_s14 = sphi %s1437_s14, %s1916_s14   ;;  %s1347_s13 = sphi %s1435_s13, %s1923_s13   ;;  %s1343_s12 = sphi %s1433_s12, %s1914_s12   ;;  %s1339_s11 = sphi %s1431_s11, %s1922_s11   ;;  %s1335_s10 = sphi %s1429_s10, %s1921_s10   ;;  %s1331_s9 = sphi %s1427_s9, %s1920_s9   ;;  %s1327_s30 = sphi %s1425_s30, %s1919_s30   ;;  %s1323_s29 = sphi %s1423_s29, %s1913_s29   ;;  %s1319_s28 = sphi %s1421_s28, %s1918_s28   ;;  %s1315_s27 = sphi %s1419_s27, %s1917_s27  }
  0x18   : > { %1869 = sst [smem:[#allocation20_spill]] %s1327_s30  ;;  %p1844_p0 = scmp.eq.s32.totalorder %s1355_s15, 0 }
  0x19   : > { %1870 = sst [smem:[#allocation21_spill]] %s1339_s11  ;;  %p1476_p1 = scmp.ge.s32.totalorder %s41_s16, 2 }
  0x1a   : > { %1871 = sst [smem:[#allocation22_spill]] %s1343_s12  ;;  %s79_s18 = sadd.s32 1, %s1323_s29 }
  0x1b   : > { %1872 = sst [smem:[#allocation23_spill]] %s1351_s14  ;;  %p86_p2 = scmp.ne.s32.totalorder %s1323_s29, %s1319_s28 }
  0x1c   : > { %s1925_s16 = smov (%p1476_p1, %s41_s16), 0  ;;  %p1843_p4 = scmp.lt.s32.totalorder %s1355_s15, 4 }
  0x1d   : > { %1874 = sst [smem:[#allocation24_spill]] %s1925_s16  ;;  %p88_p3 = por %p86_p2, %p1844_p0 }
  0x1e   : > { %s1491_s19 = ssub.s32 %s1347_s13, %s1925_s16  ;;  %s328_s20 = sand.u32 1, %s1355_s15  }
  0x1f   : > { %p77_p5 = scmp.eq.s32.totalorder %s1491_s19, 0  ;;  %s330_s21 = sand.u32 1, %s1323_s29  }
  0x20   : > { %s1500_s23 = sshll.u32 %s330_s21, 3  ;;  %s1848_s24 = sshll.u32 %s1347_s13, 7 }
  0x21   : > { %s1498_s22 = scalar_select %p77_p5, %s1323_s29, %s79_s18  }
  0x22   : > { %s1876_s1 = sld [smem:[#allocation30_spill]]  ;;  %s332_s8 = scalar_lea.vmem [#allocation5], %s1500_s23 }
  0x23   : > { %1875 = sst [smem:[#allocation25_spill]] %s1498_s22  ;;  %s339_s7 = sshll.u32 %s332_s8, 4  ;;  %s340_s7 = int_to_ptr.vmem [resolvable:$true] %s339_s7 }
  0x24   : > { %p1511_p6 = pnand %p1843_p4, %p88_p3  ;;  %p92_p7 = scmp.ne.s32.totalorder %s1319_s28, %s1315_s27 }
  0x25   : > { %s1517_s18 = scalar_lea.sflag [#allocation6], %s328_s20  ;;  %s1074_s21 = scalar_lea.vmem %s340_s7, 128 }
  0x26   : > { %s1877_s16 = scalar_select %p1511_p6, 1, 0 }
  0x27   : > { %p1842_p8 = pneg %p1511_p6  ;;  %p1075_p9 = scmp.ne.s32.totalorder %s340_s7, %s1074_s21 }
  0x28   : > { %s337_s6 = scalar_lea.hbm %s1876_s1, %s1848_s24  ;;  %s1357_s8 = smov [#allocation5]  }
  0x29   : > { %p1077_p10 = pnand %p1075_p9, %p1842_p8  ;;  %s1079_s25 = sshll.u32 %s1357_s8, 4  ;;  %s1080_s25 = int_to_ptr.vmem [resolvable:$false] %s1079_s25 }
  0x2a   : > { %s1081_s26 = scalar_lea.vmem %s1080_s25, 256  ;;  %p1082_p12 = scmp.lt.s32.totalorder %s340_s7, %s1080_s25 }
  0x2b   : > { %p1078_p11 = pneg %p1077_p10  ;;  %p1083_p13 = scmp.lt.s32.totalorder %s1081_s26, %s1074_s21 }
  0x2d   : > { %p1084_p2 = por %p1083_p13, %p1082_p12 }
  0x2f   : > { %p1085_p3 = pnand %p1084_p2, %p1078_p11 }
  0x31   : > { %1088 = shalt.err (!%p1085_p3)
}
  0x32   : > { %942 = dma.hbm_to_vmem [thread:$0]  (!%p1511_p6), %s337_s6, 128, %s340_s7, %s1517_s18  }
  0x33   : > { %s1528_s20 = sadd.s32 4294967295, %s1355_s15   ;;  %p868_p5 = scmp.ge.s32.totalorder %s1355_s15, 1 }
  0x34   : > { %p1858_p9 = scmp.eq.s32.totalorder %s1528_s20, 0  ;;  %p276_p10 = scmp.lt.s32.totalorder %s1355_s15, 5 }
  0x35   : > { %s1358_s6 = smov [#allocation8]  }
  0x36   : > { %p1538_p11 = por %p92_p7, %p1858_p9  ;;  %p1542_p12 = pnand %p868_p5, %p276_p10 }
  0x37   : > { %s294_s7 = sshll.u32 %s1358_s6, 4  ;;  %s295_s7 = int_to_ptr.vmem [resolvable:$true] %s294_s7 }
  0x38   : > { %s1878_s21 = scalar_select %p1538_p11, 1, 0 }
  0x39   : > { %p932_p13 = pneg %p1542_p12  ;;  %s1100_s25 = scalar_lea.vmem %s295_s7, 512 }
  0x3a   : > { %1879 = sst [smem:[#allocation26_spill]] %s1878_s21  ;;  %p1101_p8 = scmp.ne.s32.totalorder %s295_s7, %s1100_s25 }
  0x3b   : > { %p933_p2 = pnand %p932_p13, %p1858_p9  ;;  %p1108_p0 = scmp.lt.s32.totalorder %s295_s7, %s295_s7 }
  0x3c   : > { %p1109_p6 = scmp.lt.s32.totalorder %s1100_s25, %s1100_s25 }
  0x3d   : > { %p1091_p3 = pneg %p933_p2 }
  0x3e   : > { %p1110_p11 = por %p1109_p6, %p1108_p0 }
  0x3f   : > { %p1103_p4 = pnand %p1101_p8, %p1091_p3 }
  0x41   : > { %p1104_p7 = pneg %p1103_p4 }
  0x43   : > { %p1111_p5 = pnand %p1110_p11, %p1104_p7 }
  0x45   : > { %1114 = shalt.err (!%p1111_p5)
}
  0x46   : > { %s1359_s27 = smov 128   ;;  %s1360_s26 = smov 8  }
  0x47   : > { %s1881_s5 = sld [smem:[#allocation33_spill]]  ;;  %s1855_s24 = sadd.s32 4294967294, %s1355_s15  }
  0x48   : > { %s44_s1 = sadd.s32 1, %s1351_s14  ;;  %s53_s22 = sadd.s32 1, %s1335_s10 }
  0x49   : > { %s1927_s1 = smov (!%p1476_p1, %s44_s1), %s1351_s14  ;;  %p60_p0 = scmp.ne.s32.totalorder %s1335_s10, %s1331_s9 }
  0x4a   : > { %p66_p4 = scmp.ne.s32.totalorder %s1331_s9, %s1327_s30  ;;  %p46_p6 = scmp.ge.s32.totalorder %s1927_s1, 2 }
  0x4b   : > { %p207_p8 = scmp.eq.s32.totalorder %s1528_s20, 3  ;;  %p1882_p10 = scmp.eq.s32.totalorder %s1355_s15, 0 }
  0x4c   : > { %p1572_p13 = por %p1858_p9, %p66_p4  ;;  %s1929_s1 = smov (%p46_p6, %s1927_s1), 0 }
  0x4d   : > { %935 = dma.hbm_to_vmem [thread:$0]  (!%p933_p2), %s1881_s5, 512, %s295_s7, [#allocation9], %s1359_s27, %s1359_s27, %s1360_s26  }
  0x4e   : > { %p1566_p11 = por %p1882_p10, %p60_p0  ;;  %1885 = sst [smem:[#allocation27_spill]] %s1929_s1 }
  0x4f   : > { %p1578_p1 = por %p207_p8, %p60_p0  ;;  %p213_p2 = scmp.eq.s32.totalorder %s1855_s24, 3 }
  0x50   : > { %s48_s27 = ssub.s32 %s1351_s14, %s1929_s1  ;;  %s308_s26 = sand.u32 1, %s1335_s10  }
  0x51   : > { %s1886_s17 = scalar_select %p1578_p1, 1, 0 }
  0x52   : > { %s50_s6 = sor.u32 %s1491_s19, %s48_s27  ;;  %p1588_p3 = por %p213_p2, %p66_p4 }
  0x53   : > { %1887 = sst [smem:[#allocation28_spill]] %s1886_s17  ;;  %p51_p7 = scmp.eq.s32.totalorder %s50_s6, 0 }
  0x54   : > { %s1888_s25 = scalar_select %p1588_p3, 1, 0 }
  0x55   : > { %s871_s5 = sshll.u32 %s308_s26, 3  ;;  %s872_s30 = sshll.u32 %s1351_s14, 1 }
  0x56   : > { %s1594_s11 = scalar_select %p51_p7, %s1335_s10, %s53_s22  }
  0x57   : > { %s317_s12 = sadd.s32 %s1347_s13, %s872_s30  ;;  %s312_s4 = scalar_lea.vmem [#allocation2], %s871_s5 }
  0x58   : > { %s873_s17 = sshll.u32 %s317_s12, 7  ;;  %s321_s3 = sshll.u32 %s312_s4, 4  ;;  %s322_s3 = int_to_ptr.vmem [resolvable:$true] %s321_s3 }
  0x59   : > { %s1889_s0 = sld [smem:[#allocation29_spill]]  ;;  %p1890_p5 = scmp.lt.s32.totalorder %s1355_s15, 4 }
  0x5a   : > { %s350_s27 = scalar_lea.vmem [#allocation7], %s1500_s23  ;;  %s1892_s22 = sshll.u32 %s1347_s13, 7 }
  0x5b   : > { %p1604_p0 = pnand %p1890_p5, %p1566_p11  ;;  %s357_s6 = sshll.u32 %s350_s27, 4  ;;  %s1616_s6 = int_to_ptr.vmem [resolvable:$true] %s357_s6 }
  0x5c   : > { %s1614_s5 = scalar_lea.hbm %s1831_s2, %s1892_s22  ;;  %s309_s4 = scalar_lea.sflag [#allocation3], %s308_s26 }
  0x5d   : > { %p1117_p4 = pneg %p1604_p0  ;;  %s1128_s29 = scalar_lea.vmem %s322_s3, 128 }
  0x5e   : > { %p1129_p6 = scmp.ne.s32.totalorder %s322_s3, %s1128_s29  ;;  %s1361_s12 = smov [#allocation2]  }
  0x5f   : > { %s319_s1 = scalar_lea.hbm %s1889_s0, %s873_s17  ;;  %s1133_s24 = sshll.u32 %s1361_s12, 4  ;;  %s1134_s24 = int_to_ptr.vmem [resolvable:$false] %s1133_s24 }
  0x60   : > { %p1131_p8 = pnand %p1129_p6, %p1117_p4  ;;  %s1135_s23 = scalar_lea.vmem %s1134_s24, 256 }
  0x61   : > { %p1136_p11 = scmp.lt.s32.totalorder %s322_s3, %s1134_s24  ;;  %p1137_p2 = scmp.lt.s32.totalorder %s1135_s23, %s1128_s29 }
  0x62   : > { %p1132_p10 = pneg %p1131_p8 }
  0x63   : > { %p1138_p7 = por %p1137_p2, %p1136_p11 }
  0x65   : > { %p1139_p5 = pnand %p1138_p7, %p1132_p10 }
  0x67   : > { %1142 = shalt.err (!%p1139_p5)
}
  0x68   : > { %939 = dma.hbm_to_vmem [thread:$0]  (!%p1604_p0), %s319_s1, 128, %s322_s3, %s309_s4  }
  0x69   : > { %s1156_s14 = scalar_lea.vmem %s1616_s6, 128  ;;  %p1893_p4 = scmp.ne.s32.totalorder %s1877_s16, 0 }
  0x6a   : > { %p1157_p9 = scmp.ne.s32.totalorder %s1616_s6, %s1156_s14  ;;  %s1362_s21 = smov [#allocation7]  }
  0x6b   : > { %p1894_p6 = pneg %p1893_p4  ;;  %s1161_s17 = sshll.u32 %s1362_s21, 4  ;;  %s1162_s17 = int_to_ptr.vmem [resolvable:$false] %s1161_s17 }
  0x6c   : > { %s1163_s26 = scalar_lea.vmem %s1162_s17, 256  ;;  %p1164_p11 = scmp.lt.s32.totalorder %s1616_s6, %s1162_s17 }
  0x6d   : > { %p1159_p8 = pnand %p1157_p9, %p1894_p6  ;;  %p1165_p10 = scmp.lt.s32.totalorder %s1163_s26, %s1156_s14 }
  0x6f   : > { %p1160_p3 = pneg %p1159_p8  ;;  %p1166_p2 = por %p1165_p10, %p1164_p11 }
  0x71   : > { %p1167_p7 = pnand %p1166_p2, %p1160_p3 }
  0x73   : > { %1170 = shalt.err (!%p1167_p7)
}
  0x74   : > { %945 = dma.hbm_to_vmem [thread:$0]  (!%p1893_p4), %s1614_s5, 128, %s1616_s6, %s1517_s18  }
  0x75   : > { %366 = sbr.rel (%p1542_p12) target bundleno = 831 (0x33f), region = 44  ;;  %s1636_s1 = sand.u32 (!%p1542_p12), 1, %s1331_s9  }
  0x76   : > { %s1639_s3 = sshll.u32 (!%p1542_p12), %s1636_s1, 3  ;;  %s369_s19 = scalar_lea.sflag (!%p1542_p12), [#allocation3], %s1636_s1 }
  0x77   : > { %s372_s27 = scalar_lea.vmem (!%p1542_p12), [#allocation2], %s1639_s3 }
  0x7a   : > { %1294 = dma.done.wait (%p1572_p13), %s369_s19, 128  }
  0x7b   : > { %1296 = vsyncadd (%p1572_p13), %s369_s19, 4294967168  ;;  %s1895_s16 = sld [smem:[#allocation26_spill]]  ;;  %s377_s18 = sand.u32 1, %s1528_s20  }
  0x7c   : > { %s379_s8 = sand.u32 1, %s1319_s28   ;;  %s378_s22 = scalar_lea.sflag [#allocation6], %s377_s18 }
  0x7d   : > { %s1649_s6 = sshll.u32 %s379_s8, 3 }
  0x7e   : > { %s381_s30 = scalar_lea.vmem [#allocation5], %s1649_s6 }
  0x81   : > { %p1896_p9 = scmp.ne.s32.totalorder %s1895_s16, 0 }
  0x83   : > { %1298 = dma.done.wait (%p1896_p9), %s378_s22, 256  }
  0x84   : > { %1300 = vsyncadd (%p1896_p9), %s378_s22, 4294967040  ;;  %s390_s7 = scalar_lea.vmem [#allocation7], %s1649_s6  ;;  %p1897_p12 = scmp.eq.s32.totalorder %s1528_s20, 0 }
  0x86   : > { %1302 = dma.done.wait (%p1897_p12), [#allocation9], 512   ;;  %p1898_p13 = pmov %p1897_p12 }
  0x87   : > { %vm450_vm0 = vcmask 261120   ;;  %v447_v0 = vld [vmem:[%s372_s27] sm:$0xff]  ;;  %v1363_v8 = vmov 0.0   ;;  %vm1364_vm1 = vmmov 0   ;;  %v480_v10 = vld [vmem:[#allocation8 + $0x8] sm:$0xff]  ;;  %v479_v11 = vld [vmem:[#allocation8] sm:$0xff] }
  0x88   : > { %1304 = vsyncadd (%p1898_p13), [#allocation9], 4294966784  ;;  %v451_v1 = vsel %vm450_vm0, %v447_v0, 0.0  ;;  %v482_v7 = vld [vmem:[#allocation8 + $0x18] sm:$0xff]  ;;  %905 = vmatprep.subr.mxu0 %v1363_v8  ;;  %v481_v9 = vld [vmem:[#allocation8 + $0x10] sm:$0xff]  ;;  %913 = vmatprep.mubr.msk.f32.mxu0 %vm1364_vm1, %v1363_v8  ;;  %s1899_s29 = sld [smem:[#allocation31_spill]] }
  0x89   : > { %452 = vadd.xlane.f32.xlu0 %v451_v1  ;;  %906 = vmatpush3.msra.mxu0 %v482_v7  ;;  %s1900_s23 = sld [smem:[#allocation32_spill]]  ;;  %s1365_s14 = smov 124   ;;  %vm565_vm2 = vcmask 31744   ;;  %vm567_vm3 = vcmask 64512   ;;  %vm569_vm4 = vcmask 97280   ;;  %vm571_vm5 = vcmask 130048  }
  0x8a   : > { %907 = vmatprep.subr.mxu0 %v1363_v8  ;;  %s1366_s21 = smov 92   ;;  %s1367_s17 = smov 100   ;;  %vm573_vm6 = vcmask 162816   ;;  %vm575_vm7 = vcmask 195584   ;;  %vm577_vm8 = vcmask 228352   ;;  %v557_v33 = vld [vmem:[%s390_s7] sm:$0xff] }
  0x8b   : > { %908 = vmatpush3.msra.mxu0 %v481_v9  ;;  %s1901_s26 = sld [smem:[#allocation22_spill]]  ;;  %s1368_s19 = smov 4   ;;  %v556_v39 = vld [vmem:[%s381_s30] sm:$0xff] }
  0x8c   : > { %909 = vmatprep.subr.mxu0 %v1363_v8  ;;  %s1369_s27 = smov 96   ;;  %s1370_s16 = smov 64  }
  0x8d   : > { %910 = vmatpush3.msra.mxu0 %v480_v10  ;;  %s1902_s8 = sld [smem:[#allocation21_spill]]  ;;  %s439_s4 = scalar_lea.vmem [#allocation11], %s1639_s3 }
  0x8e   : > { %911 = vmatprep.subr.mxu0 %v1363_v8  ;;  %v886_v16 = vld [vmem:[%s1899_s29] ss:$0 sm:$0xff]  ;;  %s648_s29 = sshll.u32 %s439_s4, 4  ;;  %s446_s12 = scalar_lea.vmem [#allocation13], %s1639_s3  ;;  %s1693_s29 = int_to_ptr.vmem [resolvable:$true] %s648_s29 }
  0x8f   : > { %912 = vmatpush3.msra.mxu0 %v479_v11  ;;  %v887_v18 = vld [vmem:[%s1900_s23] ss:$0 sm:$0xff]  ;;  %s663_s24 = sshll.u32 %s446_s12, 4  ;;  %s1859_s23 = scalar_lea.vmem [#allocation10], %s1639_s3  ;;  %s1709_s24 = int_to_ptr.vmem [resolvable:$true] %s663_s24 }
  0x90   : > { %s1906_s30 = sld [smem:[#allocation34_spill]]  ;;  %s1722_s0 = scalar_lea.sflag [#allocation12], %s377_s18 }
  0x91   : > { %s892_s22 = sshll.u32 %s1901_s26, 1 }
  0x93   : > { %s629_s5 = sadd.s32 %s1902_s8, %s892_s22 }
  0x94   : > { %s893_s7 = sshll.u32 %s629_s5, 7 }
 0x112   : > { %v453_v2 = vpop.xlane.xlu0 %452 }
 0x113   : > { %v455_v3 = vmul.f32 0.03125, %v453_v2 }
 0x115   : > { %v456_v4 = vsub.f32 %v447_v0, %v455_v3 }
 0x117   : > { %v457_v5 = vmul.f32 %v456_v4, %v456_v4 }
 0x119   : > { %v458_v6 = vsel %vm450_vm0, %v457_v5, 0.0 }
 0x11a   : > { %459 = vadd.xlane.f32.xlu0 %v458_v6 }
 0x1a3   : > { %v460_v12 = vpop.xlane.xlu0 %459 }
 0x1a4   : > { %v461_v13 = vmul.f32 0.03125, %v460_v12 }
 0x1a6   : > { %v462_v14 = vadd.f32 1e-05, %v461_v13 }
 0x1a8   : > { %1059 = vrsqrt.f32 %v462_v14 }
 0x1b5   : > { %v1060_v15 = vpop.eup %1059 }
 0x1b6   : > { %v464_v17 = vmul.f32 %v1060_v15, %v456_v4 }
 0x1b8   : > { %v471_v19 = vmul.f32 %v886_v16, %v464_v17 }
 0x1ba   : > { %v478_v20 = vadd.f32 %v887_v18, %v471_v19 }
 0x1bc   : > { %914 = vmatmul.mubr.msk.f32.vlgmr.msra.gmra.mxu0 %vm450_vm0, %v478_v20 }
 0x27c   : > { %v552_v21 = vpop.f32.mrf.mxu0 }
 0x27d   : > { %559 = vrot.lane.b32.xlu0 %v552_v21, %s1365_s14  ;;  %583 = vrot.lane.b32.xlu1 %v552_v21, %s1366_s21  ;;  %s633_s14 = sshll.u32 %s1859_s23, 4  ;;  %v579_v48 = vmul.f32 %v556_v39, %v552_v21  ;;  %s1907_s21 = smov %s1906_s30  ;;  %s1718_s14 = int_to_ptr.vmem [resolvable:$true] %s633_s14 }
 0x27e   : > { %v915_v22 = vpop.f32.mrf.mxu0  ;;  %s1716_s23 = scalar_lea.hbm %s1906_s30, %s893_s7 }
 0x281   : > { %586 = vrot.lane.b32.xlu1 %v552_v21, %s1367_s17  ;;  %s1904_s17 = sld [smem:[#allocation35_spill]] }
 0x285   : > { %562 = vrot.lane.b32.xlu1 %v552_v21, %s1368_s19  ;;  %s1171_s19 = scalar_lea.vmem %s1693_s29, 128 }
 0x286   : > { %p1172_p3 = scmp.ne.s32.totalorder %s1693_s29, %s1171_s19 }
 0x287   : > { %s1702_s26 = scalar_lea.hbm %s1904_s17, %s893_s7 }
 0x288   : > { %p1173_p0 = pnand %p1172_p3, %p1578_p1 }
 0x289   : > { %596 = vrot.lane.b32.xlu1 %v552_v21, %s1369_s27  ;;  %s1371_s27 = smov [#allocation11]  }
 0x28a   : > { %p1174_p5 = pneg %p1173_p0 }
 0x28d   : > { %603 = vrot.lane.b32.xlu1 %v552_v21, %s1370_s16  ;;  %s1905_s16 = sld [smem:[#allocation36_spill]] }
 0x293   : > { %s1707_s8 = scalar_lea.hbm %s1905_s16, %s893_s7 }
 0x2ef   : > { %v584_v23 = vpop.permute.xlu1 %583  ;;  %v560_v28 = vpop.permute.xlu0 %559 }
 0x2f3   : > { %v587_v24 = vpop.permute.xlu1 %586 }
 0x2f4   : > { %v589_v25 = vsel %vm565_vm2, %v584_v23, %v587_v24 }
 0x2f5   : > { %v590_v26 = vsel %vm567_vm3, %v589_v25, %v584_v23 }
 0x2f6   : > { %v591_v27 = vsel %vm569_vm4, %v590_v26, %v587_v24 }
 0x2f7   : > { %v592_v29 = vsel %vm571_vm5, %v591_v27, %v584_v23  ;;  %v563_v30 = vpop.permute.xlu1 %562 }
 0x2f8   : > { %v593_v31 = vsel %vm573_vm6, %v592_v29, %v587_v24  ;;  %v566_v32 = vsel %vm565_vm2, %v560_v28, %v563_v30 }
 0x2f9   : > { %v568_v34 = vsel %vm567_vm3, %v566_v32, %v560_v28  ;;  %v594_v35 = vsel %vm575_vm7, %v593_v31, %v584_v23 }
 0x2fa   : > { %v570_v36 = vsel %vm569_vm4, %v568_v34, %v563_v30  ;;  %v595_v37 = vsel %vm577_vm8, %v594_v35, %v587_v24 }
 0x2fb   : > { %v572_v38 = vsel %vm571_vm5, %v570_v36, %v560_v28  ;;  %v600_v40 = vmul.f32 %v595_v37, %v557_v33  ;;  %v597_v41 = vpop.permute.xlu1 %596 }
 0x2fc   : > { %v574_v42 = vsel %vm573_vm6, %v572_v38, %v563_v30  ;;  %v599_v43 = vmul.f32 %v597_v41, %v556_v39 }
 0x2fd   : > { %v576_v44 = vsel %vm575_vm7, %v574_v42, %v560_v28 }
 0x2fe   : > { %v578_v45 = vsel %vm577_vm8, %v576_v44, %v563_v30  ;;  %v601_v46 = vadd.f32 %v600_v40, %v599_v43 }
 0x2ff   : > { %v580_v47 = vmul.f32 %v578_v45, %v557_v33  ;;  %v604_v49 = vpop.permute.xlu1 %603 }
 0x300   : > { %606 = vst.msk [vmem:[%s446_s12] sm:$0xff] %vm450_vm0, %v604_v49  ;;  %602 = vst.msk [vmem:[%s439_s4] sm:$0xff] %vm450_vm0, %v601_v46  ;;  %s1175_s12 = sshll.u32 %s1371_s27, 4  ;;  %s1176_s12 = int_to_ptr.vmem [resolvable:$false] %s1175_s12 }
 0x301   : > { %v581_v50 = vadd.f32 %v580_v47, %v579_v48  ;;  %s1177_s4 = scalar_lea.vmem %s1176_s12, 256  ;;  %p1178_p4 = scmp.lt.s32.totalorder %s1693_s29, %s1176_s12 }
 0x302   : > { %p1179_p6 = scmp.lt.s32.totalorder %s1177_s4, %s1171_s19 }
 0x304   : > { %p1180_p8 = por %p1179_p6, %p1178_p4 }
 0x306   : > { %p1181_p11 = pnand %p1180_p8, %p1174_p5 }
 0x308   : > { %1184 = shalt.err (!%p1181_p11)
}
 0x309   : > { %s1185_s20 = scalar_lea.hbm %s1702_s26, 128  ;;  %s1189_s22 = scalar_lea.hbm %s1904_s17, 512 }
 0x30a   : > { %p1186_p10 = scmp.ne.s32.totalorder %s1702_s26, %s1185_s20  ;;  %p1190_p9 = scmp.lt.s32.totalorder %s1702_s26, %s1904_s17 }
 0x30b   : > { %p1191_p12 = scmp.lt.s32.totalorder %s1189_s22, %s1185_s20 }
 0x30c   : > { %p1187_p2 = pnand %p1186_p10, %p1578_p1 }
 0x30d   : > { %p1192_p13 = por %p1191_p12, %p1190_p9 }
 0x30e   : > { %p1188_p7 = pneg %p1187_p2 }
 0x310   : > { %p1193_p3 = pnand %p1192_p13, %p1188_p7 }
 0x312   : > { %1196 = shalt.err (!%p1193_p3)
}
 0x313   : > { %927 = dma.vmem_to_hbm [thread:$0]  (%p1578_p1), %s1693_s29, 128, %s1702_s26, %s1722_s0  }
 0x314   : > { %s1197_s19 = scalar_lea.vmem %s1709_s24, 128  ;;  %s1372_s27 = smov [#allocation13]  }
 0x315   : > { %p1198_p0 = scmp.ne.s32.totalorder %s1709_s24, %s1197_s19  ;;  %s1201_s12 = sshll.u32 %s1372_s27, 4  ;;  %s1202_s12 = int_to_ptr.vmem [resolvable:$false] %s1201_s12 }
 0x316   : > { %s1203_s4 = scalar_lea.vmem %s1202_s12, 256  ;;  %p1204_p6 = scmp.lt.s32.totalorder %s1709_s24, %s1202_s12 }
 0x317   : > { %p1199_p5 = pnand %p1198_p0, %p1578_p1  ;;  %p1205_p8 = scmp.lt.s32.totalorder %s1203_s4, %s1197_s19 }
 0x319   : > { %p1200_p4 = pneg %p1199_p5  ;;  %p1206_p11 = por %p1205_p8, %p1204_p6 }
 0x31b   : > { %p1207_p10 = pnand %p1206_p11, %p1200_p4 }
 0x31d   : > { %1210 = shalt.err (!%p1207_p10)
}
 0x31e   : > { %s1211_s20 = scalar_lea.hbm %s1707_s8, 128  ;;  %s1215_s18 = scalar_lea.hbm %s1905_s16, 512 }
 0x31f   : > { %p1212_p2 = scmp.ne.s32.totalorder %s1707_s8, %s1211_s20  ;;  %p1216_p12 = scmp.lt.s32.totalorder %s1707_s8, %s1905_s16 }
 0x320   : > { %p1217_p13 = scmp.lt.s32.totalorder %s1215_s18, %s1211_s20 }
 0x321   : > { %p1213_p7 = pnand %p1212_p2, %p1578_p1 }
 0x322   : > { %p1218_p3 = por %p1217_p13, %p1216_p12 }
 0x323   : > { %p1214_p9 = pneg %p1213_p7 }
 0x325   : > { %p1219_p0 = pnand %p1218_p3, %p1214_p9 }
 0x327   : > { %1222 = shalt.err (!%p1219_p0)
}
 0x328   : > { %928 = dma.vmem_to_hbm [thread:$0]  (%p1578_p1), %s1709_s24, 128, %s1707_s8, %s1722_s0  }
 0x329   : > { %s1908_s5 = scalar_lea.vmem [#allocation10], %s1639_s3  ;;  %s608_s30 = scalar_lea.sflag [#allocation4], %s1636_s1 }
 0x32a   : > { %582 = vst.msk [vmem:[%s1908_s5] sm:$0xff] %vm450_vm0, %v581_v50  ;;  %s1223_s19 = scalar_lea.vmem %s1718_s14, 128  ;;  %s1373_s27 = smov [#allocation10]  }
 0x32b   : > { %p1224_p5 = scmp.ne.s32.totalorder %s1718_s14, %s1223_s19  ;;  %s1227_s12 = sshll.u32 %s1373_s27, 4  ;;  %s1228_s12 = int_to_ptr.vmem [resolvable:$false] %s1227_s12 }
 0x32c   : > { %s1229_s4 = scalar_lea.vmem %s1228_s12, 256  ;;  %p1230_p8 = scmp.lt.s32.totalorder %s1718_s14, %s1228_s12 }
 0x32d   : > { %p1225_p4 = pnand %p1224_p5, %p1578_p1  ;;  %p1231_p11 = scmp.lt.s32.totalorder %s1229_s4, %s1223_s19 }
 0x32f   : > { %p1226_p6 = pneg %p1225_p4  ;;  %p1232_p10 = por %p1231_p11, %p1230_p8 }
 0x331   : > { %p1233_p2 = pnand %p1232_p10, %p1226_p6 }
 0x333   : > { %1236 = shalt.err (!%p1233_p2)
}
 0x334   : > { %s1237_s0 = scalar_lea.hbm %s1716_s23, 128  ;;  %s1241_s24 = scalar_lea.hbm %s1907_s21, 512 }
 0x335   : > { %p1238_p7 = scmp.ne.s32.totalorder %s1716_s23, %s1237_s0  ;;  %p1242_p13 = scmp.lt.s32.totalorder %s1716_s23, %s1907_s21 }
 0x336   : > { %p1243_p3 = scmp.lt.s32.totalorder %s1241_s24, %s1237_s0 }
 0x337   : > { %p1239_p9 = pnand %p1238_p7, %p1578_p1 }
 0x338   : > { %p1244_p0 = por %p1243_p3, %p1242_p13 }
 0x339   : > { %p1240_p12 = pneg %p1239_p9 }
 0x33b   : > { %p1245_p5 = pnand %p1244_p0, %p1240_p12 }
 0x33d   : > { %1248 = shalt.err (!%p1245_p5)
}
 0x33e   : > { %926 = dma.vmem_to_hbm [thread:$0]  (%p1578_p1), %s1718_s14, 128, %s1716_s23, %s608_s30  }
 0x33f PF: > { %s1909_s29 = sld [smem:[#allocation20_spill]]  ;;  %p959_p4 = scmp.ge.s32.totalorder %s1355_s15, 2 }
 0x340   : > { %p1910_p6 = scmp.ne.s32.totalorder %s1888_s25, 0 }
 0x342   : > { %p947_p8 = pnand %p959_p4, %p1910_p6 }
 0x344   : > { %p948_p11 = pneg %p947_p8 }
 0x345   : > { %s675_s26 = sand.u32 1, %s1909_s29  }
 0x346   : > { %s676_s18 = scalar_lea.sflag [#allocation4], %s675_s26 }
 0x347   : > { %1306 = dma.done.wait (%p948_p11), %s676_s18, 128  }
 0x348   : > { %1308 = vsyncadd (%p948_p11), %s676_s18, 4294967168  ;;  %s1911_s7 = sadd.s32 4294967294, %s1355_s15  }
 0x349   : > { %s684_s22 = sand.u32 1, %s1911_s7  }
 0x34a   : > { %s685_s5 = scalar_lea.sflag [#allocation12], %s684_s22 }
 0x34b   : > { %1310 = dma.done.wait (%p948_p11), %s685_s5, 256  }
 0x34c   : > { %1312 = vsyncadd (%p948_p11), %s685_s5, 4294967040  ;;  %s32_s15 = sadd.s32 1, %s1355_s15   ;;  %s1912_s23 = sld [smem:[#allocation19_spill]] }
 0x34d   : > { %p29_p1 = scmp.ge.s32.totalorder %s32_s15, 6   ;;  %s1913_s29 = sld [smem:[#allocation25_spill]] }
 0x34e   : > { %s1914_s12 = sld [smem:[#allocation23_spill]]  ;;  %s1917_s27 = smov %s1319_s28 }
 0x34f   : > { %s1915_s25 = sld [smem:[#allocation24_spill]]  ;;  %s1919_s30 = smov %s1331_s9 }
 0x350   : > { %s1916_s14 = sld [smem:[#allocation27_spill]]  ;;  %s1920_s9 = smov %s1335_s10 }
 0x351   : > { %s1921_s10 = smov %s1594_s11  ;;  %s1922_s11 = smov %s1347_s13 }
 0x352   : > { %s1918_s28 = smov %s1912_s23  ;;  %31 = sbr.rel (!%p29_p1) target bundleno = 23 (0x17), region = 149 }
 0x355   : > { %s1923_s13 = smov %s1915_s25 }
 0x357   :  { %699 = vsyncpa [#allocation3], 1 }
 0x358   :  { %701 = vsyncpa [#allocation3 + $0x1], 1 }
 0x359   :  { %702 = vsyncpa [#allocation6], 1 }
 0x35a   :  { %704 = vsyncpa [#allocation6 + $0x1], 1 }
 0x35b   :  { %705 = vsyncpa [#allocation9], 1 }
 0x35c   :  { %706 = vsyncpa [#allocation4], 1 }
 0x35d   :  { %708 = vsyncpa [#allocation4 + $0x1], 1 }
 0x35e   :  { %709 = vsyncpa [#allocation12], 1 }
 0x35f   :  { %711 = vsyncpa [#allocation12 + $0x1], 1 }

</bundles_post_ra>
